<compile_context>
chip_gen: v7x
topology: tpu7x:2x2x1
jax: 0.10.0
libtpu: 0.0.40
codegen_flags: <defaults>
</compile_context>

<pallas_src>
import math

import jax
import jax.numpy as jnp
from jax.experimental import pallas as pl
from jax.experimental.pallas import tpu as pltpu

# ---------------- configuration (small, consistent with the module) ----------------
B = 2            # batch
LQ = 8           # query sequence length
LK = 8           # key sequence length
H = 32           # hidden_size
N_HEADS = 2      # n_heads
HEAD = H // N_HEADS
INNER = 64       # intermediate_size
EPS = 1e-12      # layer_norm_eps
INV_SQRT_HEAD = 1.0 / math.sqrt(HEAD)

# ---- packed parameter slab layout ----
# weight slab: (192, 64) f32, row-blocks (all sublane-aligned):
WQ_R, WKV_R, WO_R, W1_R, W2_R = 0, 32, 64, 96, 128
W_ROWS, W_COLS = 192, 64
# vector slab: (16, 128) f32, one vector per row starting at lane 0:
#   0: bq, 1: [bk | bv], 2: bo, 3: b1, 4: b2, 5: g1, 6: be1, 7: g2, 8: be2
V_ROWS, V_COLS = 16, 128


def _erf_f32(x):
    # float32 erf rational approximation (same form XLA uses for f32 erf),
    # built only from mul/add/div so it lowers cleanly in Mosaic.
    # TODO(synk): tanh-approximate GELU would run on the EUP but changes numerics
    #             (~1e-3); exact-erf form kept to match the torch module.
    x = jnp.clip(x, -4.0, 4.0)
    x2 = x * x
    alpha = (2.2905065861350646e-04, 3.4082910107109506e-03,
             5.0955695062380861e-02, 1.8520832239976145e-01,
             1.1283791435190840e+00)
    beta = (-1.1791602954361697e-07, 2.3547966471313185e-05,
            1.0179625278914885e-03, 1.4070470171167667e-02,
            1.1098505178285362e-01, 4.9746925110067538e-01, 1.0)
    p = jnp.full_like(x2, alpha[0])
    for c in alpha[1:]:
        p = p * x2 + c
    q = jnp.full_like(x2, beta[0])
    for c in beta[1:]:
        q = q * x2 + c
    return x * p / q


def _gelu_erf(x):
    # exact-gelu as in the torch module: x * 0.5 * (1 + erf(x / sqrt(2)))
    return x * 0.5 * (1.0 + _erf_f32(x * (1.0 / math.sqrt(2.0))))


def _layernorm(x, gamma, beta):
    mu = jnp.mean(x, axis=-1, keepdims=True)
    var = jnp.mean((x - mu) * (x - mu), axis=-1, keepdims=True)
    return (x - mu) * jax.lax.rsqrt(var + EPS) * gamma + beta


def cross_attn_kernel(q_ref, k_ref, mask_ref, w_ref, v_ref, out_ref):
    q2 = q_ref[...]          # (B*LQ, H) flattened query activations
    k2 = k_ref[...]          # (B*LK, H) flattened key activations

    # ---- packed vector parameters (each a (1, n) row, broadcast over rows) ----
    bq = v_ref[0:1, 0:H]
    bkv = v_ref[1:2, 0:2 * H]
    bo = v_ref[2:3, 0:H]
    b1 = v_ref[3:4, 0:INNER]
    b2 = v_ref[4:5, 0:H]
    g1 = v_ref[5:6, 0:H]
    be1 = v_ref[6:7, 0:H]
    g2 = v_ref[7:8, 0:H]
    be2 = v_ref[8:9, 0:H]

    # ---- fused projections on the flattened layout (2 MXU pushes total) ----
    mq = jnp.dot(q2, w_ref[WQ_R:WQ_R + H, 0:H],
                 preferred_element_type=jnp.float32) + bq          # (B*LQ, H)
    kv = jnp.dot(k2, w_ref[WKV_R:WKV_R + H, 0:2 * H],
                 preferred_element_type=jnp.float32) + bkv         # (B*LK, 2H): [K | V]

    # ---- per-batch, per-head attention; head contexts folded into the output
    #      projection via row-slices of Wo (no lane-axis concatenation) ----
    dense_parts = []
    for b in range(B):
        mask_b = mask_ref[b]                                       # (LQ, LK)
        acc = None
        for h in range(N_HEADS):
            qh = mq[b * LQ:(b + 1) * LQ, h * HEAD:(h + 1) * HEAD]          # (LQ, HEAD)
            kh = kv[b * LK:(b + 1) * LK, h * HEAD:(h + 1) * HEAD]          # (LK, HEAD)
            vh = kv[b * LK:(b + 1) * LK, H + h * HEAD:H + (h + 1) * HEAD]  # (LK, HEAD)

            scores = jax.lax.dot_general(
                qh, kh, (((1,), (1,)), ((), ())),
                preferred_element_type=jnp.float32) * INV_SQRT_HEAD
            scores = scores + mask_b
            scores = scores - jnp.max(scores, axis=-1, keepdims=True)
            p = jnp.exp(scores)
            p = p * (1.0 / jnp.sum(p, axis=-1, keepdims=True))

            ctx = jnp.dot(p, vh, preferred_element_type=jnp.float32)       # (LQ, HEAD)
            wo_h = w_ref[WO_R + h * HEAD:WO_R + (h + 1) * HEAD, 0:H]       # (HEAD, H)
            part = jnp.dot(ctx, wo_h, preferred_element_type=jnp.float32)  # (LQ, H)
            acc = part if acc is None else acc + part
        dense_parts.append(acc)

    # sublane (row) concat of the per-batch blocks is cheap (vreg-aligned 8-row pieces)
    attn_dense = jnp.concatenate(dense_parts, axis=0) + bo                 # (B*LQ, H)

    # ---- output LayerNorm + residual (residual AFTER LN, as in the torch code) ----
    attn_hidden = _layernorm(attn_dense, g1, be1) + q2

    # ---- feed-forward: dense_1 -> gelu(erf) -> dense_2 -> LayerNorm -> +residual ----
    h1 = jnp.dot(attn_hidden, w_ref[W1_R:W1_R + H, 0:INNER],
                 preferred_element_type=jnp.float32) + b1
    h1 = _gelu_erf(h1)
    h2 = jnp.dot(h1, w_ref[W2_R:W2_R + INNER, 0:H],
                 preferred_element_type=jnp.float32) + b2
    out = _layernorm(h2, g2, be2) + attn_hidden

    out_ref[...] = out.astype(out_ref.dtype)


def cross_attention_layer(query, key, attention_mask, packed):
    """query: (B, LQ, H), key: (B, LK, H), attention_mask: (B, 1, LQ, LK)."""
    q2 = query.reshape(B * LQ, H)          # free (contiguous) reshapes in the wrapper
    k2 = key.reshape(B * LK, H)
    mask = attention_mask.reshape(B, LQ, LK)

    fn = pl.pallas_call(
        cross_attn_kernel,
        out_shape=jax.ShapeDtypeStruct((B * LQ, H), jnp.float32),
        grid_spec=pltpu.PrefetchScalarGridSpec(
            num_scalar_prefetch=0,
            grid=(1,),                                         # single step: all batches at once
            in_specs=[
                pl.BlockSpec((B * LQ, H), lambda i: (0, 0)),       # flattened query
                pl.BlockSpec((B * LK, H), lambda i: (0, 0)),       # flattened key
                pl.BlockSpec((B, LQ, LK), lambda i: (0, 0, 0)),    # additive mask
                pl.BlockSpec((W_ROWS, W_COLS), lambda i: (0, 0)),  # packed weight slab
                pl.BlockSpec((V_ROWS, V_COLS), lambda i: (0, 0)),  # packed vector slab
            ],
            out_specs=pl.BlockSpec((B * LQ, H), lambda i: (0, 0)),
        ),
        compiler_params=pltpu.CompilerParams(
            dimension_semantics=("arbitrary",)),
    )
    out = fn(q2, k2, mask, packed["w"], packed["vec"])
    return out.reshape(B, LQ, H)


def make_params(rng):
    def nxt():
        nonlocal rng
        rng, sub = jax.random.split(rng)
        return sub

    scale = 0.05
    # individual weights, stored as (in_features, out_features) = torch weight transposed
    wq = jax.random.normal(nxt(), (H, H), jnp.float32) * scale
    bq = jax.random.normal(nxt(), (H,), jnp.float32) * scale
    wk = jax.random.normal(nxt(), (H, H), jnp.float32) * scale
    bk = jax.random.normal(nxt(), (H,), jnp.float32) * scale
    wv = jax.random.normal(nxt(), (H, H), jnp.float32) * scale
    bv = jax.random.normal(nxt(), (H,), jnp.float32) * scale
    wo = jax.random.normal(nxt(), (H, H), jnp.float32) * scale
    bo = jax.random.normal(nxt(), (H,), jnp.float32) * scale
    w1 = jax.random.normal(nxt(), (H, INNER), jnp.float32) * scale
    b1 = jax.random.normal(nxt(), (INNER,), jnp.float32) * scale
    w2 = jax.random.normal(nxt(), (INNER, H), jnp.float32) * scale
    b2 = jax.random.normal(nxt(), (H,), jnp.float32) * scale
    g1, be1 = jnp.ones((H,), jnp.float32), jnp.zeros((H,), jnp.float32)   # torch LN defaults
    g2, be2 = jnp.ones((H,), jnp.float32), jnp.zeros((H,), jnp.float32)

    # ---- pack into the two slabs (done once at construction time) ----
    w = jnp.zeros((W_ROWS, W_COLS), jnp.float32)
    w = w.at[WQ_R:WQ_R + H, 0:H].set(wq)
    w = w.at[WKV_R:WKV_R + H, 0:H].set(wk)
    w = w.at[WKV_R:WKV_R + H, H:2 * H].set(wv)
    w = w.at[WO_R:WO_R + H, 0:H].set(wo)
    w = w.at[W1_R:W1_R + H, 0:INNER].set(w1)
    w = w.at[W2_R:W2_R + INNER, 0:H].set(w2)

    vec = jnp.zeros((V_ROWS, V_COLS), jnp.float32)
    vec = vec.at[0, 0:H].set(bq)
    vec = vec.at[1, 0:H].set(bk)
    vec = vec.at[1, H:2 * H].set(bv)
    vec = vec.at[2, 0:H].set(bo)
    vec = vec.at[3, 0:INNER].set(b1)
    vec = vec.at[4, 0:H].set(b2)
    vec = vec.at[5, 0:H].set(g1)
    vec = vec.at[6, 0:H].set(be1)
    vec = vec.at[7, 0:H].set(g2)
    vec = vec.at[8, 0:H].set(be2)

    return {"w": w, "vec": vec}


if __name__ == "__main__":
    root = jax.random.PRNGKey(0)
    k_param, k_q, k_k = jax.random.split(root, 3)

    packed = make_params(k_param)
    query = jax.random.normal(k_q, (B, LQ, H), jnp.float32)
    key = jax.random.normal(k_k, (B, LK, H), jnp.float32)

    # deterministic additive attention mask: batch 0 attends to all keys,
    # batch 1 attends only to the first 5 keys (0 where allowed, -1e4 where masked).
    key_lens = jnp.array([LK, 5], dtype=jnp.int32)                      # (B,)
    col = jnp.arange(LK)[None, None, None, :]                           # (1,1,1,LK)
    allowed = col < key_lens[:, None, None, None]                       # (B,1,1,LK)
    attention_mask = jnp.where(allowed, 0.0, -10000.0).astype(jnp.float32)
    attention_mask = jnp.broadcast_to(attention_mask, (B, 1, LQ, LK))

    out = cross_attention_layer(query, key, attention_mask, packed)
    out = jax.block_until_ready(out)

    assert out.shape == (B, LQ, H)
    assert bool(jnp.all(jnp.isfinite(out)))
    print("KERNEL_OK")
</pallas_src>

<mosaic_0001>
module attributes {stable_mosaic.version = 11 : i64} {
  func.func @cross_attn_kernel(%arg0: i32, %arg1: memref<16x32xf32, #tpu.memory_space<vmem>>, %arg2: memref<16x32xf32, #tpu.memory_space<vmem>>, %arg3: memref<2x8x8xf32, #tpu.memory_space<vmem>>, %arg4: memref<192x64xf32, #tpu.memory_space<vmem>>, %arg5: memref<16x128xf32, #tpu.memory_space<vmem>>, %arg6: memref<16x32xf32, #tpu.memory_space<vmem>>) attributes {dimension_semantics = [#tpu.dimension_semantics<arbitrary>], iteration_bounds = array<i64: 1>, scalar_prefetch = 0 : i64, scratch_operands = 0 : i64, tpu.core_type = #tpu.core_type<tc>, window_params = [{pipeline_mode = #tpu.pipeline_mode<synchronous>, transform_indices = @transform_0, window_bounds = array<i64: 16, 32>}, {pipeline_mode = #tpu.pipeline_mode<synchronous>, transform_indices = @transform_1, window_bounds = array<i64: 16, 32>}, {pipeline_mode = #tpu.pipeline_mode<synchronous>, transform_indices = @transform_2, window_bounds = array<i64: 2, 8, 8>}, {pipeline_mode = #tpu.pipeline_mode<synchronous>, transform_indices = @transform_3, window_bounds = array<i64: 192, 64>}, {pipeline_mode = #tpu.pipeline_mode<synchronous>, transform_indices = @transform_4, window_bounds = array<i64: 16, 128>}, {pipeline_mode = #tpu.pipeline_mode<synchronous>, transform_indices = @transform_5, window_bounds = array<i64: 16, 32>}]} {
    %c0 = arith.constant 0 : index
    %c0_0 = arith.constant 0 : index
    %0 = vector.load %arg1[%c0, %c0_0] : memref<16x32xf32, #tpu.memory_space<vmem>>, vector<16x32xf32>
    %c0_1 = arith.constant 0 : index
    %c0_2 = arith.constant 0 : index
    %1 = vector.load %arg2[%c0_1, %c0_2] : memref<16x32xf32, #tpu.memory_space<vmem>>, vector<16x32xf32>
    %c0_3 = arith.constant 0 : index
    %c0_4 = arith.constant 0 : index
    %2 = vector.load %arg5[%c0_3, %c0_4] : memref<16x128xf32, #tpu.memory_space<vmem>>, vector<1x32xf32>
    %c1 = arith.constant 1 : index
    %c0_5 = arith.constant 0 : index
    %3 = vector.load %arg5[%c1, %c0_5] : memref<16x128xf32, #tpu.memory_space<vmem>>, vector<1x64xf32>
    %c2 = arith.constant 2 : index
    %c0_6 = arith.constant 0 : index
    %4 = vector.load %arg5[%c2, %c0_6] : memref<16x128xf32, #tpu.memory_space<vmem>>, vector<1x32xf32>
    %c3 = arith.constant 3 : index
    %c0_7 = arith.constant 0 : index
    %5 = vector.load %arg5[%c3, %c0_7] : memref<16x128xf32, #tpu.memory_space<vmem>>, vector<1x64xf32>
    %c4 = arith.constant 4 : index
    %c0_8 = arith.constant 0 : index
    %6 = vector.load %arg5[%c4, %c0_8] : memref<16x128xf32, #tpu.memory_space<vmem>>, vector<1x32xf32>
    %c5 = arith.constant 5 : index
    %c0_9 = arith.constant 0 : index
    %7 = vector.load %arg5[%c5, %c0_9] : memref<16x128xf32, #tpu.memory_space<vmem>>, vector<1x32xf32>
    %c6 = arith.constant 6 : index
    %c0_10 = arith.constant 0 : index
    %8 = vector.load %arg5[%c6, %c0_10] : memref<16x128xf32, #tpu.memory_space<vmem>>, vector<1x32xf32>
    %c7 = arith.constant 7 : index
    %c0_11 = arith.constant 0 : index
    %9 = vector.load %arg5[%c7, %c0_11] : memref<16x128xf32, #tpu.memory_space<vmem>>, vector<1x32xf32>
    %c8 = arith.constant 8 : index
    %c0_12 = arith.constant 0 : index
    %10 = vector.load %arg5[%c8, %c0_12] : memref<16x128xf32, #tpu.memory_space<vmem>>, vector<1x32xf32>
    %c0_13 = arith.constant 0 : index
    %c0_14 = arith.constant 0 : index
    %11 = vector.load %arg4[%c0_13, %c0_14] : memref<192x64xf32, #tpu.memory_space<vmem>>, vector<32x32xf32>
    %cst = arith.constant dense<0.000000e+00> : vector<16x32xf32>
    %12 = tpu.matmul %0, %11, %cst {dimension_numbers = #tpu.dot_dimension_numbers<[1], [0], [0], [1], [0, 0, 1, 1], [], []>} : vector<16x32xf32>, vector<32x32xf32>, vector<16x32xf32> -> vector<16x32xf32>
    %13 = vector.broadcast %2 : vector<1x32xf32> to vector<16x32xf32>
    %14 = arith.addf %12, %13 : vector<16x32xf32>
    %c32 = arith.constant 32 : index
    %c0_15 = arith.constant 0 : index
    %15 = vector.load %arg4[%c32, %c0_15] : memref<192x64xf32, #tpu.memory_space<vmem>>, vector<32x64xf32>
    %cst_16 = arith.constant dense<0.000000e+00> : vector<16x64xf32>
    %16 = tpu.matmul %1, %15, %cst_16 {dimension_numbers = #tpu.dot_dimension_numbers<[1], [0], [0], [1], [0, 0, 1, 1], [], []>} : vector<16x32xf32>, vector<32x64xf32>, vector<16x64xf32> -> vector<16x64xf32>
    %17 = vector.broadcast %3 : vector<1x64xf32> to vector<16x64xf32>
    %18 = arith.addf %16, %17 : vector<16x64xf32>
    %c0_17 = arith.constant 0 : index
    %c0_18 = arith.constant 0 : index
    %c0_19 = arith.constant 0 : index
    %19 = vector.load %arg3[%c0_17, %c0_18, %c0_19] : memref<2x8x8xf32, #tpu.memory_space<vmem>>, vector<1x8x8xf32>
    %20 = vector.shape_cast %19 : vector<1x8x8xf32> to vector<8x8xf32>
    %21 = vector.extract_strided_slice %14 {offsets = [0, 0], sizes = [8, 16], strides = [1, 1]} : vector<16x32xf32> to vector<8x16xf32>
    %22 = vector.extract_strided_slice %18 {offsets = [0, 0], sizes = [8, 16], strides = [1, 1]} : vector<16x64xf32> to vector<8x16xf32>
    %23 = vector.extract_strided_slice %18 {offsets = [0, 32], sizes = [8, 16], strides = [1, 1]} : vector<16x64xf32> to vector<8x16xf32>
    %cst_20 = arith.constant dense<0.000000e+00> : vector<8x8xf32>
    %24 = tpu.matmul %21, %22, %cst_20 {dimension_numbers = #tpu.dot_dimension_numbers<[1], [1], [0], [0], [0, 0, 1, 0], [], []>} : vector<8x16xf32>, vector<8x16xf32>, vector<8x8xf32> -> vector<8x8xf32>
    %cst_21 = arith.constant 2.500000e-01 : f32
    %25 = vector.broadcast %cst_21 : f32 to vector<8x8xf32>
    %26 = arith.mulf %24, %25 : vector<8x8xf32>
    %27 = arith.addf %26, %20 : vector<8x8xf32>
    %cst_22 = arith.constant dense<0xFF800000> : vector<8xf32>
    %28 = vector.multi_reduction <maximumf>, %27, %cst_22 [1] : vector<8x8xf32> to vector<8xf32>
    %29 = vector.shape_cast %28 : vector<8xf32> to vector<8x1xf32>
    %30 = vector.broadcast %29 : vector<8x1xf32> to vector<8x8xf32>
    %31 = arith.subf %27, %30 : vector<8x8xf32>
    %32 = math.exp %31 : vector<8x8xf32>
    %cst_23 = arith.constant dense<0.000000e+00> : vector<8xf32>
    %33 = vector.multi_reduction <add>, %32, %cst_23 [1] : vector<8x8xf32> to vector<8xf32>
    %34 = vector.shape_cast %33 : vector<8xf32> to vector<8x1xf32>
    %cst_24 = arith.constant 1.000000e+00 : f32
    %35 = vector.broadcast %cst_24 : f32 to vector<8x1xf32>
    %36 = arith.divf %35, %34 : vector<8x1xf32>
    %37 = vector.broadcast %36 : vector<8x1xf32> to vector<8x8xf32>
    %38 = arith.mulf %32, %37 : vector<8x8xf32>
    %cst_25 = arith.constant dense<0.000000e+00> : vector<8x16xf32>
    %39 = tpu.matmul %38, %23, %cst_25 {dimension_numbers = #tpu.dot_dimension_numbers<[1], [0], [0], [1], [0, 0, 1, 1], [], []>} : vector<8x8xf32>, vector<8x16xf32>, vector<8x16xf32> -> vector<8x16xf32>
    %c64 = arith.constant 64 : index
    %c0_26 = arith.constant 0 : index
    %40 = vector.load %arg4[%c64, %c0_26] : memref<192x64xf32, #tpu.memory_space<vmem>>, vector<16x32xf32>
    %cst_27 = arith.constant dense<0.000000e+00> : vector<8x32xf32>
    %41 = tpu.matmul %39, %40, %cst_27 {dimension_numbers = #tpu.dot_dimension_numbers<[1], [0], [0], [1], [0, 0, 1, 1], [], []>} : vector<8x16xf32>, vector<16x32xf32>, vector<8x32xf32> -> vector<8x32xf32>
    %42 = vector.extract_strided_slice %14 {offsets = [0, 16], sizes = [8, 16], strides = [1, 1]} : vector<16x32xf32> to vector<8x16xf32>
    %43 = vector.extract_strided_slice %18 {offsets = [0, 16], sizes = [8, 16], strides = [1, 1]} : vector<16x64xf32> to vector<8x16xf32>
    %44 = vector.extract_strided_slice %18 {offsets = [0, 48], sizes = [8, 16], strides = [1, 1]} : vector<16x64xf32> to vector<8x16xf32>
    %cst_28 = arith.constant dense<0.000000e+00> : vector<8x8xf32>
    %45 = tpu.matmul %42, %43, %cst_28 {dimension_numbers = #tpu.dot_dimension_numbers<[1], [1], [0], [0], [0, 0, 1, 0], [], []>} : vector<8x16xf32>, vector<8x16xf32>, vector<8x8xf32> -> vector<8x8xf32>
    %cst_29 = arith.constant 2.500000e-01 : f32
    %46 = vector.broadcast %cst_29 : f32 to vector<8x8xf32>
    %47 = arith.mulf %45, %46 : vector<8x8xf32>
    %48 = arith.addf %47, %20 : vector<8x8xf32>
    %cst_30 = arith.constant dense<0xFF800000> : vector<8xf32>
    %49 = vector.multi_reduction <maximumf>, %48, %cst_30 [1] : vector<8x8xf32> to vector<8xf32>
    %50 = vector.shape_cast %49 : vector<8xf32> to vector<8x1xf32>
    %51 = vector.broadcast %50 : vector<8x1xf32> to vector<8x8xf32>
    %52 = arith.subf %48, %51 : vector<8x8xf32>
    %53 = math.exp %52 : vector<8x8xf32>
    %cst_31 = arith.constant dense<0.000000e+00> : vector<8xf32>
    %54 = vector.multi_reduction <add>, %53, %cst_31 [1] : vector<8x8xf32> to vector<8xf32>
    %55 = vector.shape_cast %54 : vector<8xf32> to vector<8x1xf32>
    %cst_32 = arith.constant 1.000000e+00 : f32
    %56 = vector.broadcast %cst_32 : f32 to vector<8x1xf32>
    %57 = arith.divf %56, %55 : vector<8x1xf32>
    %58 = vector.broadcast %57 : vector<8x1xf32> to vector<8x8xf32>
    %59 = arith.mulf %53, %58 : vector<8x8xf32>
    %cst_33 = arith.constant dense<0.000000e+00> : vector<8x16xf32>
    %60 = tpu.matmul %59, %44, %cst_33 {dimension_numbers = #tpu.dot_dimension_numbers<[1], [0], [0], [1], [0, 0, 1, 1], [], []>} : vector<8x8xf32>, vector<8x16xf32>, vector<8x16xf32> -> vector<8x16xf32>
    %c80 = arith.constant 80 : index
    %c0_34 = arith.constant 0 : index
    %61 = vector.load %arg4[%c80, %c0_34] : memref<192x64xf32, #tpu.memory_space<vmem>>, vector<16x32xf32>
    %cst_35 = arith.constant dense<0.000000e+00> : vector<8x32xf32>
    %62 = tpu.matmul %60, %61, %cst_35 {dimension_numbers = #tpu.dot_dimension_numbers<[1], [0], [0], [1], [0, 0, 1, 1], [], []>} : vector<8x16xf32>, vector<16x32xf32>, vector<8x32xf32> -> vector<8x32xf32>
    %63 = arith.addf %41, %62 : vector<8x32xf32>
    %c1_36 = arith.constant 1 : index
    %c0_37 = arith.constant 0 : index
    %c0_38 = arith.constant 0 : index
    %64 = vector.load %arg3[%c1_36, %c0_37, %c0_38] : memref<2x8x8xf32, #tpu.memory_space<vmem>>, vector<1x8x8xf32>
    %65 = vector.shape_cast %64 : vector<1x8x8xf32> to vector<8x8xf32>
    %66 = vector.extract_strided_slice %14 {offsets = [8, 0], sizes = [8, 16], strides = [1, 1]} : vector<16x32xf32> to vector<8x16xf32>
    %67 = vector.extract_strided_slice %18 {offsets = [8, 0], sizes = [8, 16], strides = [1, 1]} : vector<16x64xf32> to vector<8x16xf32>
    %68 = vector.extract_strided_slice %18 {offsets = [8, 32], sizes = [8, 16], strides = [1, 1]} : vector<16x64xf32> to vector<8x16xf32>
    %cst_39 = arith.constant dense<0.000000e+00> : vector<8x8xf32>
    %69 = tpu.matmul %66, %67, %cst_39 {dimension_numbers = #tpu.dot_dimension_numbers<[1], [1], [0], [0], [0, 0, 1, 0], [], []>} : vector<8x16xf32>, vector<8x16xf32>, vector<8x8xf32> -> vector<8x8xf32>
    %cst_40 = arith.constant 2.500000e-01 : f32
    %70 = vector.broadcast %cst_40 : f32 to vector<8x8xf32>
    %71 = arith.mulf %69, %70 : vector<8x8xf32>
    %72 = arith.addf %71, %65 : vector<8x8xf32>
    %cst_41 = arith.constant dense<0xFF800000> : vector<8xf32>
    %73 = vector.multi_reduction <maximumf>, %72, %cst_41 [1] : vector<8x8xf32> to vector<8xf32>
    %74 = vector.shape_cast %73 : vector<8xf32> to vector<8x1xf32>
    %75 = vector.broadcast %74 : vector<8x1xf32> to vector<8x8xf32>
    %76 = arith.subf %72, %75 : vector<8x8xf32>
    %77 = math.exp %76 : vector<8x8xf32>
    %cst_42 = arith.constant dense<0.000000e+00> : vector<8xf32>
    %78 = vector.multi_reduction <add>, %77, %cst_42 [1] : vector<8x8xf32> to vector<8xf32>
    %79 = vector.shape_cast %78 : vector<8xf32> to vector<8x1xf32>
    %cst_43 = arith.constant 1.000000e+00 : f32
    %80 = vector.broadcast %cst_43 : f32 to vector<8x1xf32>
    %81 = arith.divf %80, %79 : vector<8x1xf32>
    %82 = vector.broadcast %81 : vector<8x1xf32> to vector<8x8xf32>
    %83 = arith.mulf %77, %82 : vector<8x8xf32>
    %cst_44 = arith.constant dense<0.000000e+00> : vector<8x16xf32>
    %84 = tpu.matmul %83, %68, %cst_44 {dimension_numbers = #tpu.dot_dimension_numbers<[1], [0], [0], [1], [0, 0, 1, 1], [], []>} : vector<8x8xf32>, vector<8x16xf32>, vector<8x16xf32> -> vector<8x16xf32>
    %c64_45 = arith.constant 64 : index
    %c0_46 = arith.constant 0 : index
    %85 = vector.load %arg4[%c64_45, %c0_46] : memref<192x64xf32, #tpu.memory_space<vmem>>, vector<16x32xf32>
    %cst_47 = arith.constant dense<0.000000e+00> : vector<8x32xf32>
    %86 = tpu.matmul %84, %85, %cst_47 {dimension_numbers = #tpu.dot_dimension_numbers<[1], [0], [0], [1], [0, 0, 1, 1], [], []>} : vector<8x16xf32>, vector<16x32xf32>, vector<8x32xf32> -> vector<8x32xf32>
    %87 = vector.extract_strided_slice %14 {offsets = [8, 16], sizes = [8, 16], strides = [1, 1]} : vector<16x32xf32> to vector<8x16xf32>
    %88 = vector.extract_strided_slice %18 {offsets = [8, 16], sizes = [8, 16], strides = [1, 1]} : vector<16x64xf32> to vector<8x16xf32>
    %89 = vector.extract_strided_slice %18 {offsets = [8, 48], sizes = [8, 16], strides = [1, 1]} : vector<16x64xf32> to vector<8x16xf32>
    %cst_48 = arith.constant dense<0.000000e+00> : vector<8x8xf32>
    %90 = tpu.matmul %87, %88, %cst_48 {dimension_numbers = #tpu.dot_dimension_numbers<[1], [1], [0], [0], [0, 0, 1, 0], [], []>} : vector<8x16xf32>, vector<8x16xf32>, vector<8x8xf32> -> vector<8x8xf32>
    %cst_49 = arith.constant 2.500000e-01 : f32
    %91 = vector.broadcast %cst_49 : f32 to vector<8x8xf32>
    %92 = arith.mulf %90, %91 : vector<8x8xf32>
    %93 = arith.addf %92, %65 : vector<8x8xf32>
    %cst_50 = arith.constant dense<0xFF800000> : vector<8xf32>
    %94 = vector.multi_reduction <maximumf>, %93, %cst_50 [1] : vector<8x8xf32> to vector<8xf32>
    %95 = vector.shape_cast %94 : vector<8xf32> to vector<8x1xf32>
    %96 = vector.broadcast %95 : vector<8x1xf32> to vector<8x8xf32>
    %97 = arith.subf %93, %96 : vector<8x8xf32>
    %98 = math.exp %97 : vector<8x8xf32>
    %cst_51 = arith.constant dense<0.000000e+00> : vector<8xf32>
    %99 = vector.multi_reduction <add>, %98, %cst_51 [1] : vector<8x8xf32> to vector<8xf32>
    %100 = vector.shape_cast %99 : vector<8xf32> to vector<8x1xf32>
    %cst_52 = arith.constant 1.000000e+00 : f32
    %101 = vector.broadcast %cst_52 : f32 to vector<8x1xf32>
    %102 = arith.divf %101, %100 : vector<8x1xf32>
    %103 = vector.broadcast %102 : vector<8x1xf32> to vector<8x8xf32>
    %104 = arith.mulf %98, %103 : vector<8x8xf32>
    %cst_53 = arith.constant dense<0.000000e+00> : vector<8x16xf32>
    %105 = tpu.matmul %104, %89, %cst_53 {dimension_numbers = #tpu.dot_dimension_numbers<[1], [0], [0], [1], [0, 0, 1, 1], [], []>} : vector<8x8xf32>, vector<8x16xf32>, vector<8x16xf32> -> vector<8x16xf32>
    %c80_54 = arith.constant 80 : index
    %c0_55 = arith.constant 0 : index
    %106 = vector.load %arg4[%c80_54, %c0_55] : memref<192x64xf32, #tpu.memory_space<vmem>>, vector<16x32xf32>
    %cst_56 = arith.constant dense<0.000000e+00> : vector<8x32xf32>
    %107 = tpu.matmul %105, %106, %cst_56 {dimension_numbers = #tpu.dot_dimension_numbers<[1], [0], [0], [1], [0, 0, 1, 1], [], []>} : vector<8x16xf32>, vector<16x32xf32>, vector<8x32xf32> -> vector<8x32xf32>
    %108 = arith.addf %86, %107 : vector<8x32xf32>
    %109 = tpu.concatenate %63, %108 in 0 : vector<8x32xf32>, vector<8x32xf32> -> vector<16x32xf32>
    %110 = vector.broadcast %4 : vector<1x32xf32> to vector<16x32xf32>
    %111 = arith.addf %109, %110 : vector<16x32xf32>
    %cst_57 = arith.constant dense<0.000000e+00> : vector<16xf32>
    %112 = vector.multi_reduction <add>, %111, %cst_57 [1] : vector<16x32xf32> to vector<16xf32>
    %113 = vector.shape_cast %112 : vector<16xf32> to vector<16x1xf32>
    %cst_58 = arith.constant 3.200000e+01 : f32
    %114 = vector.broadcast %cst_58 : f32 to vector<16x1xf32>
    %115 = arith.divf %113, %114 : vector<16x1xf32>
    %116 = vector.broadcast %115 : vector<16x1xf32> to vector<16x32xf32>
    %117 = arith.subf %111, %116 : vector<16x32xf32>
    %118 = vector.broadcast %115 : vector<16x1xf32> to vector<16x32xf32>
    %119 = arith.subf %111, %118 : vector<16x32xf32>
    %120 = arith.mulf %117, %119 : vector<16x32xf32>
    %cst_59 = arith.constant dense<0.000000e+00> : vector<16xf32>
    %121 = vector.multi_reduction <add>, %120, %cst_59 [1] : vector<16x32xf32> to vector<16xf32>
    %122 = vector.shape_cast %121 : vector<16xf32> to vector<16x1xf32>
    %cst_60 = arith.constant 3.200000e+01 : f32
    %123 = vector.broadcast %cst_60 : f32 to vector<16x1xf32>
    %124 = arith.divf %122, %123 : vector<16x1xf32>
    %125 = vector.broadcast %115 : vector<16x1xf32> to vector<16x32xf32>
    %126 = arith.subf %111, %125 : vector<16x32xf32>
    %cst_61 = arith.constant 9.99999996E-13 : f32
    %127 = vector.broadcast %cst_61 : f32 to vector<16x1xf32>
    %128 = arith.addf %124, %127 : vector<16x1xf32>
    %129 = math.rsqrt %128 : vector<16x1xf32>
    %130 = vector.broadcast %129 : vector<16x1xf32> to vector<16x32xf32>
    %131 = arith.mulf %126, %130 : vector<16x32xf32>
    %132 = vector.broadcast %7 : vector<1x32xf32> to vector<16x32xf32>
    %133 = arith.mulf %131, %132 : vector<16x32xf32>
    %134 = vector.broadcast %8 : vector<1x32xf32> to vector<16x32xf32>
    %135 = arith.addf %133, %134 : vector<16x32xf32>
    %136 = arith.addf %135, %0 : vector<16x32xf32>
    %c96 = arith.constant 96 : index
    %c0_62 = arith.constant 0 : index
    %137 = vector.load %arg4[%c96, %c0_62] : memref<192x64xf32, #tpu.memory_space<vmem>>, vector<32x64xf32>
    %cst_63 = arith.constant dense<0.000000e+00> : vector<16x64xf32>
    %138 = tpu.matmul %136, %137, %cst_63 {dimension_numbers = #tpu.dot_dimension_numbers<[1], [0], [0], [1], [0, 0, 1, 1], [], []>} : vector<16x32xf32>, vector<32x64xf32>, vector<16x64xf32> -> vector<16x64xf32>
    %139 = vector.broadcast %5 : vector<1x64xf32> to vector<16x64xf32>
    %140 = arith.addf %138, %139 : vector<16x64xf32>
    %cst_64 = arith.constant 5.000000e-01 : f32
    %141 = vector.broadcast %cst_64 : f32 to vector<16x64xf32>
    %142 = arith.mulf %140, %141 : vector<16x64xf32>
    %cst_65 = arith.constant 0.707106769 : f32
    %143 = vector.broadcast %cst_65 : f32 to vector<16x64xf32>
    %144 = arith.mulf %140, %143 : vector<16x64xf32>
    %cst_66 = arith.constant -4.000000e+00 : f32
    %cst_67 = arith.constant 4.000000e+00 : f32
    %145 = vector.broadcast %cst_66 : f32 to vector<16x64xf32>
    %146 = arith.maximumf %145, %144 : vector<16x64xf32>
    %147 = vector.broadcast %cst_67 : f32 to vector<16x64xf32>
    %148 = arith.minimumf %147, %146 : vector<16x64xf32>
    %149 = arith.mulf %148, %148 : vector<16x64xf32>
    %cst_68 = arith.constant 2.29050653E-4 : f32
    %150 = vector.broadcast %cst_68 : f32 to vector<16x64xf32>
    %151 = arith.mulf %150, %149 : vector<16x64xf32>
    %cst_69 = arith.constant 0.00340829091 : f32
    %152 = vector.broadcast %cst_69 : f32 to vector<16x64xf32>
    %153 = arith.addf %151, %152 : vector<16x64xf32>
    %154 = arith.mulf %153, %149 : vector<16x64xf32>
    %cst_70 = arith.constant 0.0509556942 : f32
    %155 = vector.broadcast %cst_70 : f32 to vector<16x64xf32>
    %156 = arith.addf %154, %155 : vector<16x64xf32>
    %157 = arith.mulf %156, %149 : vector<16x64xf32>
    %cst_71 = arith.constant 0.185208321 : f32
    %158 = vector.broadcast %cst_71 : f32 to vector<16x64xf32>
    %159 = arith.addf %157, %158 : vector<16x64xf32>
    %160 = arith.mulf %159, %149 : vector<16x64xf32>
    %cst_72 = arith.constant 1.12837911 : f32
    %161 = vector.broadcast %cst_72 : f32 to vector<16x64xf32>
    %162 = arith.addf %160, %161 : vector<16x64xf32>
    %cst_73 = arith.constant -1.17916031E-7 : f32
    %163 = vector.broadcast %cst_73 : f32 to vector<16x64xf32>
    %164 = arith.mulf %163, %149 : vector<16x64xf32>
    %cst_74 = arith.constant 2.35479656E-5 : f32
    %165 = vector.broadcast %cst_74 : f32 to vector<16x64xf32>
    %166 = arith.addf %164, %165 : vector<16x64xf32>
    %167 = arith.mulf %166, %149 : vector<16x64xf32>
    %cst_75 = arith.constant 0.00101796258 : f32
    %168 = vector.broadcast %cst_75 : f32 to vector<16x64xf32>
    %169 = arith.addf %167, %168 : vector<16x64xf32>
    %170 = arith.mulf %169, %149 : vector<16x64xf32>
    %cst_76 = arith.constant 0.0140704699 : f32
    %171 = vector.broadcast %cst_76 : f32 to vector<16x64xf32>
    %172 = arith.addf %170, %171 : vector<16x64xf32>
    %173 = arith.mulf %172, %149 : vector<16x64xf32>
    %cst_77 = arith.constant 0.110985048 : f32
    %174 = vector.broadcast %cst_77 : f32 to vector<16x64xf32>
    %175 = arith.addf %173, %174 : vector<16x64xf32>
    %176 = arith.mulf %175, %149 : vector<16x64xf32>
    %cst_78 = arith.constant 0.497469246 : f32
    %177 = vector.broadcast %cst_78 : f32 to vector<16x64xf32>
    %178 = arith.addf %176, %177 : vector<16x64xf32>
    %179 = arith.mulf %178, %149 : vector<16x64xf32>
    %cst_79 = arith.constant 1.000000e+00 : f32
    %180 = vector.broadcast %cst_79 : f32 to vector<16x64xf32>
    %181 = arith.addf %179, %180 : vector<16x64xf32>
    %182 = arith.mulf %148, %162 : vector<16x64xf32>
    %183 = arith.divf %182, %181 : vector<16x64xf32>
    %cst_80 = arith.constant 1.000000e+00 : f32
    %184 = vector.broadcast %cst_80 : f32 to vector<16x64xf32>
    %185 = arith.addf %184, %183 : vector<16x64xf32>
    %186 = arith.mulf %142, %185 : vector<16x64xf32>
    %c128 = arith.constant 128 : index
    %c0_81 = arith.constant 0 : index
    %187 = vector.load %arg4[%c128, %c0_81] : memref<192x64xf32, #tpu.memory_space<vmem>>, vector<64x32xf32>
    %cst_82 = arith.constant dense<0.000000e+00> : vector<16x32xf32>
    %188 = tpu.matmul %186, %187, %cst_82 {dimension_numbers = #tpu.dot_dimension_numbers<[1], [0], [0], [1], [0, 0, 1, 1], [], []>} : vector<16x64xf32>, vector<64x32xf32>, vector<16x32xf32> -> vector<16x32xf32>
    %189 = vector.broadcast %6 : vector<1x32xf32> to vector<16x32xf32>
    %190 = arith.addf %188, %189 : vector<16x32xf32>
    %cst_83 = arith.constant dense<0.000000e+00> : vector<16xf32>
    %191 = vector.multi_reduction <add>, %190, %cst_83 [1] : vector<16x32xf32> to vector<16xf32>
    %192 = vector.shape_cast %191 : vector<16xf32> to vector<16x1xf32>
    %cst_84 = arith.constant 3.200000e+01 : f32
    %193 = vector.broadcast %cst_84 : f32 to vector<16x1xf32>
    %194 = arith.divf %192, %193 : vector<16x1xf32>
    %195 = vector.broadcast %194 : vector<16x1xf32> to vector<16x32xf32>
    %196 = arith.subf %190, %195 : vector<16x32xf32>
    %197 = vector.broadcast %194 : vector<16x1xf32> to vector<16x32xf32>
    %198 = arith.subf %190, %197 : vector<16x32xf32>
    %199 = arith.mulf %196, %198 : vector<16x32xf32>
    %cst_85 = arith.constant dense<0.000000e+00> : vector<16xf32>
    %200 = vector.multi_reduction <add>, %199, %cst_85 [1] : vector<16x32xf32> to vector<16xf32>
    %201 = vector.shape_cast %200 : vector<16xf32> to vector<16x1xf32>
    %cst_86 = arith.constant 3.200000e+01 : f32
    %202 = vector.broadcast %cst_86 : f32 to vector<16x1xf32>
    %203 = arith.divf %201, %202 : vector<16x1xf32>
    %204 = vector.broadcast %194 : vector<16x1xf32> to vector<16x32xf32>
    %205 = arith.subf %190, %204 : vector<16x32xf32>
    %cst_87 = arith.constant 9.99999996E-13 : f32
    %206 = vector.broadcast %cst_87 : f32 to vector<16x1xf32>
    %207 = arith.addf %203, %206 : vector<16x1xf32>
    %208 = math.rsqrt %207 : vector<16x1xf32>
    %209 = vector.broadcast %208 : vector<16x1xf32> to vector<16x32xf32>
    %210 = arith.mulf %205, %209 : vector<16x32xf32>
    %211 = vector.broadcast %9 : vector<1x32xf32> to vector<16x32xf32>
    %212 = arith.mulf %210, %211 : vector<16x32xf32>
    %213 = vector.broadcast %10 : vector<1x32xf32> to vector<16x32xf32>
    %214 = arith.addf %212, %213 : vector<16x32xf32>
    %215 = arith.addf %214, %136 : vector<16x32xf32>
    %c0_88 = arith.constant 0 : index
    %c0_89 = arith.constant 0 : index
    %216 = vector.load %arg6[%c0_88, %c0_89] : memref<16x32xf32, #tpu.memory_space<vmem>>, vector<16x32xf32>
    tpu.vector_store %arg6[%c0_88, %c0_89], %215 {strides = array<i32>} : memref<16x32xf32, #tpu.memory_space<vmem>>, vector<16x32xf32>,
    return
  }
  func.func @transform_0(%arg0: i32) -> (i32, i32) {
    %c0_i32 = arith.constant 0 : i32
    %c0_i32_0 = arith.constant 0 : i32
    %c0_i32_1 = arith.constant 0 : i32
    return %c0_i32, %c0_i32_0 : i32, i32
  }
  func.func @transform_1(%arg0: i32) -> (i32, i32) {
    %c0_i32 = arith.constant 0 : i32
    %c0_i32_0 = arith.constant 0 : i32
    %c0_i32_1 = arith.constant 0 : i32
    return %c0_i32, %c0_i32_0 : i32, i32
  }
  func.func @transform_2(%arg0: i32) -> (i32, i32, i32) {
    %c0_i32 = arith.constant 0 : i32
    %c0_i32_0 = arith.constant 0 : i32
    %c0_i32_1 = arith.constant 0 : i32
    %c0_i32_2 = arith.constant 0 : i32
    return %c0_i32, %c0_i32_0, %c0_i32_1 : i32, i32, i32
  }
  func.func @transform_3(%arg0: i32) -> (i32, i32) {
    %c0_i32 = arith.constant 0 : i32
    %c0_i32_0 = arith.constant 0 : i32
    %c0_i32_1 = arith.constant 0 : i32
    return %c0_i32, %c0_i32_0 : i32, i32
  }
  func.func @transform_4(%arg0: i32) -> (i32, i32) {
    %c0_i32 = arith.constant 0 : i32
    %c0_i32_0 = arith.constant 0 : i32
    %c0_i32_1 = arith.constant 0 : i32
    return %c0_i32, %c0_i32_0 : i32, i32
  }
  func.func @transform_5(%arg0: i32) -> (i32, i32) {
    %c0_i32 = arith.constant 0 : i32
    %c0_i32_0 = arith.constant 0 : i32
    %c0_i32_1 = arith.constant 0 : i32
    return %c0_i32, %c0_i32_0 : i32, i32
  }
}

</mosaic_0001>

<bundles_post_ra>
// kernel: tpu_custom_call.1
= control target key start
LH: loop header
LB: loop body
LE: loop exit
PB: predicated region body
PF: predicated region fallthrough
CT: control target
= control target key end

     0   :  { %vm42_vm0 = vcmask 261120   ;;  %s2137_s0 = inlined_call_operand.vmem [shape: f32[16,32], index: 0, kind: input, shape index: {}]   ;;  %s2138_s1 = inlined_call_operand.vmem [shape: f32[16,32], index: 1, kind: input, shape index: {}]   ;;  %s2139_s2 = inlined_call_operand.vmem [shape: f32[2,8,8], index: 2, kind: input, shape index: {}]   ;;  %s2140_s3 = inlined_call_operand.vmem [shape: f32[192,64], index: 3, kind: input, shape index: {}]   ;;  %s2141_s4 = inlined_call_operand.vmem [shape: f32[16,128], index: 4, kind: input, shape index: {}]   ;;  %s2142_s5 = inlined_call_operand.hbm [shape: f32[16,32], index: 5, kind: output, shape index: {}]  }
   0x1   :  { %v124_v0 = vld [vmem:[%s2140_s3 + $0x20] sm:$0xff]  ;;  %v125_v1 = vld [vmem:[%s2140_s3 + $0x28] sm:$0xff]  ;;  %v126_v5 = vld [vmem:[%s2140_s3 + $0x30] sm:$0xff] }
   0x2   :  { %v34_v2 = vld [vmem:[%s2140_s3] sm:$0xff]  ;;  %v1750_v3 = vpack.c.bf16 %v125_v1, %v124_v0  ;;  %v35_v4 = vld [vmem:[%s2140_s3 + $0x8] sm:$0xff]  ;;  %v127_v6 = vld [vmem:[%s2140_s3 + $0x38] sm:$0xff] }
   0x3   :  { %v1742_v7 = vpack.c.bf16 %v35_v4, %v34_v2  ;;  %v1754_v8 = vpack.c.bf16 %v127_v6, %v126_v5  ;;  %v36_v9 = vld [vmem:[%s2140_s3 + $0x10] sm:$0xff]  ;;  %v37_v10 = vld [vmem:[%s2140_s3 + $0x18] sm:$0xff]  ;;  %v23_v11 = vld [vmem:[%s2138_s1] sm:$0xff] }
   0x4   :  { %1751 = vmatprep.subr.bf16.mxu1 %v1750_v3  ;;  %v1746_v12 = vpack.c.bf16 %v37_v10, %v36_v9  ;;  %1641 = vmatprep.mubr.msk.f32.mxu1 %vm42_vm0, %v23_v11  ;;  %v1925_v13 = vld [vmem:[%s2137_s0] sm:$0xff] }
   0x5   :  { %1753 = vmatpush3.bf16.msra.mxu1 %v1750_v3  ;;  %1743 = vmatprep.subr.bf16.mxu0 %v1742_v7 }
   0x6   :  { %10 = vsyncpa [#allocation3], 0  ;;  %1745 = vmatpush3.bf16.msra.mxu0 %v1742_v7  ;;  %1755 = vmatprep.subr.bf16.mxu1 %v1754_v8  ;;  %v24_v14 = vld [vmem:[%s2138_s1 + $0x8] sm:$0xff]  ;;  %v1855_v16 = vmov 0.0   ;;  %vm1856_vm1 = vmmov 0   ;;  %vm214_vm2 = vcmask 130048  }
   0x7   :  { %1747 = vmatprep.subr.bf16.mxu0 %v1746_v12  ;;  %1630 = vmatprep.mubr.msk.f32.mxu0 %vm42_vm0, %v1925_v13  ;;  %v1935_v15 = vld [vmem:[%s2137_s0 + $0x8] sm:$0xff]  ;;  %v1533_v17 = vld [vmem:[%s2141_s4 + $0x1] ss:$0 sm:$0xff]  ;;  %v1530_v18 = vld [vmem:[%s2141_s4] ss:$0 sm:$0xff]  ;;  %s1857_s19 = smov 96  }
   0x8   :  { %s1858_s20 = smov 112   ;;  %v213_v29 = vld [vmem:[%s2139_s2] sm:$0xff]  ;;  %vm293_vm3 = vcmask 64512   ;;  %s1859_s23 = smov 80   ;;  %v1860_v57 = vmov 0.0|0.0   ;;  %v552_v58 = vld [vmem:[%s2140_s3 + $0x50] sm:$0xff] }
   0x9   :  { %1757 = vmatpush3.bf16.msra.mxu1 %v1754_v8  ;;  %v553_v59 = vld [vmem:[%s2140_s3 + $0x58] sm:$0xff]  ;;  %v382_v62 = vld [vmem:[%s2140_s3 + $0x40] sm:$0xff]  ;;  %v383_v63 = vld [vmem:[%s2140_s3 + $0x48] sm:$0xff]  ;;  %vm1390_vm4 = vcmask 523264   ;;  %s1861_s1 = smov [#allocation2]  }
   0xa   :  { %1749 = vmatpush3.bf16.msra.mxu0 %v1746_v12  ;;  %1659 = vmatprep.subr.mxu1 %v1855_v16  ;;  %v1759_v60 = vpack.c.bf16 %v553_v59, %v552_v58  ;;  %v1999_v1 = vpack.c.bf16 %v383_v63, %v382_v62  ;;  %s1519_s0 = sshll.u32 %s1861_s1, 4  ;;  %s1520_s0 = int_to_ptr.vmem [resolvable:$true] %s1519_s0 }
   0xb   :  { %1644 = vmatprep.subr.mxu0 %v1855_v16  ;;  %s1831_s17 = scalar_lea.vmem %s1520_s0, 256  ;;  %p1836_p1 = scmp.lt.s32.totalorder %s1520_s0, %s1520_s0 }
   0xc   :  { %1642 = vmatmul.mubr.msk.f32.vlgmr.msra.gmra.mrb[0].mxu1 %vm42_vm0, %v24_v14  ;;  %v1544_v14 = vld [vmem:[%s2139_s2 + $0x8] sm:$0xff]  ;;  %p1832_p0 = scmp.ne.s32.totalorder %s1520_s0, %s1831_s17  ;;  %p1837_p2 = scmp.lt.s32.totalorder %s1831_s17, %s1831_s17 }
   0xd   :  { %1631 = vmatmul.mubr.msk.f32.vlgmr.msra.gmra.mrb[0].mxu0 %vm42_vm0, %v1935_v15  ;;  %1661 = vmatprep.mubr.msk.f32.mxu1 %vm1856_vm1, %v1855_v16 }
   0xe   :  { %1646 = vmatprep.mubr.msk.f32.mxu0 %vm1856_vm1, %v1855_v16  ;;  %p1838_p3 = por %p1837_p2, %p1836_p1 }
  0x10   :  { %p1839_p4 = pnand %p1838_p3, %p1832_p0 }
  0xdf   :  { %v1643_v19 = vpop.f32.mrb[0].mxu1 }
  0xe0   :  { %v1952_v20 = vadd.f32 %v1643_v19, %v1533_v17  ;;  %v204_v21 = vpop.f32.mrb[1].mxu1  ;;  %v1632_v22 = vpop.f32.mrb[0].mxu0 }
  0xe1   :  { %v205_v23 = vadd.f32 %v1533_v17, %v204_v21  ;;  %v1954_v24 = vadd.f32 %v1632_v22, %v1530_v18  ;;  %v115_v25 = vpop.f32.mrb[1].mxu0 }
  0xe2   :  { %v116_v26 = vadd.f32 %v1530_v18, %v115_v25 }
  0xe3   :  { %306 = vrot.lane.b32.xlu1 %v205_v23, %s1857_s19  ;;  %1645 = vmatpush3.xpose.msk.msra.mxu0 %vm214_vm2, %v205_v23 }
  0xe4   :  { %1649 = vmatprep.subr.mxu0 %v1855_v16 }
  0xe6   :  { %1647 = vmatmul.mubr.msk.f32.vlgmr.msra.gmra.mrb[2].mxu0 %vm214_vm2, %v116_v26 }
  0xe7   :  { %386 = vrot.lane.b32.xlu1 %v205_v23, %s1858_s20  ;;  %1651 = vmatprep.mubr.msk.f32.mxu0 %vm1856_vm1, %v1855_v16 }
 0x155   :  { %v307_v27 = vpop.permute.xlu1 %306 }
 0x156   :  { %1650 = vmatpush3.msra.mxu0 %v307_v27 }
 0x157   :  { %1654 = vmatprep.subr.mxu0 %v1855_v16 }
 0x159   :  { %v387_v42 = vpop.permute.xlu1 %386 }
 0x1b9   :  { %v287_v28 = vpop.f32.mrb[2].mxu0 }
 0x1ba   :  { %v291_v30 = vmul.f32 0.25, %v287_v28  ;;  %v1648_v31 = vpop.f32.mrb[3].mxu0 }
 0x1bc   :  { %v292_v32 = vadd.f32 %v291_v30, %v213_v29 }
 0x1be   :  { %v294_v33 = vsel %vm293_vm3, %v292_v32, -inf }
 0x1bf   :  { %295 = vmax.xlane.f32.xlu0 %v294_v33 }
 0x24c   :  { %v296_v34 = vpop.xlane.xlu0 %295 }
 0x24d   :  { %v297_v35 = vsub.f32 %v292_v32, %v296_v34 }
 0x24f   :  { %v298_v36 = vmul.f32 1.442695, %v297_v35 }
 0x251   :  { %1803 = vpow2.f32 %v298_v36 }
 0x25b   :  { %v1804_v37 = vpop.eup %1803 }
 0x25c   :  { %v300_v38 = vsel %vm293_vm3, %v1804_v37, 0.0 }
 0x25d   :  { %301 = vadd.xlane.f32.xlu0 %v300_v38 }
 0x273   :  { %384 = vrot.lane.b32.xlu0 %v116_v26, %s1858_s20 }
 0x2ea   :  { %v302_v39 = vpop.xlane.xlu0 %301 }
 0x2eb   :  { %1805 = vrcp.f32 %v302_v39 }
 0x2ee   :  { %v385_v43 = vpop.permute.xlu0 %384 }
 0x2f5   :  { %v1806_v40 = vpop.eup %1805 }
 0x2f6   :  { %v305_v41 = vmul.f32 %v1806_v40, %v1804_v37  ;;  %v1553_v37 = vld [vmem:[%s2141_s4 + $0x2] ss:$0 sm:$0xff] }
 0x2f8   :  { %1652 = vmatmul.mubr.msk.f32.vlgmr.msra.gmra.mrb[4].mxu0 %vm293_vm3, %v305_v41 }
 0x2f9   :  { %1655 = vmatpush3.xpose.msk.msra.mxu0 %vm214_vm2, %v387_v42  ;;  %1656 = vmatprep.mubr.msk.f32.mxu0 %vm1856_vm1, %v1855_v16 }
 0x2fa   :  { %1758 = vmatprep.subr.bf16.mxu0 %v1860_v57 }
 0x2fc   :  { %1657 = vmatmul.mubr.msk.f32.vlgmr.msra.gmra.mrb[6].mxu0 %vm214_vm2, %v385_v43 }
 0x2fd   :  { %1668 = vmatprep.mubr.msk.f32.mxu0 %vm1856_vm1, %v1855_v16  ;;  %1760 = vmatpush3.bf16.msra.mxu0 %v1759_v60 }
 0x2fe   :  { %1678 = vmatprep.subr.mxu0 %v1855_v16 }
 0x3cb   :  { %v378_v44 = vpop.f32.mrb[4].mxu0 }
 0x3cc   :  { %v1653_v45 = vpop.f32.mrb[5].mxu0 }
 0x3cf   :  { %v458_v46 = vpop.f32.mrb[6].mxu0 }
 0x3d0   :  { %v462_v47 = vmul.f32 0.25, %v458_v46  ;;  %v1658_v48 = vpop.f32.mrb[7].mxu0 }
 0x3d2   :  { %v463_v49 = vadd.f32 %v462_v47, %v213_v29 }
 0x3d4   :  { %v464_v50 = vsel %vm293_vm3, %v463_v49, -inf }
 0x3d5   :  { %465 = vmax.xlane.f32.xlu1 %v464_v50 }
 0x3e6   :  { %476 = vrot.lane.b32.xlu1 %v205_v23, %s1859_s23 }
 0x3ea   :  { %868 = vrot.lane.b32.xlu1 %v1954_v24, %s1858_s20 }
 0x462   :  { %v466_v51 = vpop.xlane.xlu1 %465 }
 0x463   :  { %v467_v52 = vsub.f32 %v463_v49, %v466_v51 }
 0x465   :  { %v468_v53 = vmul.f32 1.442695, %v467_v52 }
 0x466   :  { %v477_v54 = vpop.permute.xlu1 %476 }
 0x467   :  { %1807 = vpow2.f32 %v468_v53  ;;  %1660 = vmatpush3.msra.mxu1 %v477_v54 }
 0x468   :  { %1761 = vmatprep.subr.bf16.mxu1 %v1860_v57 }
 0x46a   :  { %v869_v8 = vpop.permute.xlu1 %868 }
 0x471   :  { %v1808_v55 = vpop.eup %1807 }
 0x472   :  { %v470_v56 = vsel %vm293_vm3, %v1808_v55, 0.0 }
 0x473   :  { %471 = vadd.xlane.f32.xlu0 %v470_v56  ;;  %v1554_v56 = vld [vmem:[%s2141_s4 + $0x5] ss:$0 sm:$0xff] }
 0x489   :  { %870 = vrot.lane.b32.xlu0 %v1952_v20, %s1858_s20 }
 0x500   :  { %v472_v61 = vpop.xlane.xlu0 %471 }
 0x501   :  { %1809 = vrcp.f32 %v472_v61 }
 0x504   :  { %v871_v6 = vpop.permute.xlu0 %870 }
 0x50b   :  { %v1810_v0 = vpop.eup %1809 }
 0x50c   :  { %v475_v2 = vmul.f32 %v1810_v0, %v1808_v55 }
 0x50e   :  { %1662 = vmatmul.mubr.msk.f32.vlgmr.msra.gmra.mrb[2].mxu1 %vm293_vm3, %v475_v2 }
 0x50f   :  { %1763 = vmatpush3.bf16.msra.mxu1 %v1999_v1  ;;  %1675 = vmatprep.mubr.msk.f32.mxu1 %vm1856_vm1, %v1855_v16 }
 0x510   :  { %1683 = vmatprep.subr.mxu1 %v1855_v16 }
 0x512   :  { %1676 = vmatmul.mubr.msk.f32.vlgmr.msra.gmra.mrb[4].mxu1 %vm214_vm2, %v378_v44 }
 0x513   :  { %1685 = vmatprep.mubr.msk.f32.mxu1 %vm1856_vm1, %v1855_v16 }
 0x5e1   :  { %v548_v3 = vpop.f32.mrb[2].mxu1 }
 0x5e2   :  { %v1663_v4 = vpop.f32.mrb[3].mxu1  ;;  %1669 = vmatmul.mubr.msk.f32.vlgmr.msra.gmra.mrb[8].mxu0 %vm214_vm2, %v548_v3 }
 0x5e3   :  { %1679 = vmatpush3.xpose.msk.msra.mxu0 %vm214_vm2, %v1952_v20  ;;  %1680 = vmatprep.mubr.msk.f32.mxu0 %vm1856_vm1, %v1855_v16 }
 0x5e4   :  { %1688 = vmatprep.subr.mxu0 %v1855_v16 }
 0x5e5   :  { %v696_v5 = vpop.f32.mrb[4].mxu1 }
 0x5e6   :  { %v1677_v7 = vpop.f32.mrb[5].mxu1  ;;  %1681 = vmatmul.mubr.msk.f32.vlgmr.msra.gmra.mrb[10].mxu0 %vm214_vm2, %v1954_v24 }
 0x5e7   :  { %1689 = vmatpush3.xpose.msk.msra.mxu0 %vm214_vm2, %v871_v6  ;;  %1690 = vmatprep.mubr.msk.f32.mxu0 %vm1856_vm1, %v1855_v16 }
 0x5e8   :  { %1764 = vmatprep.subr.bf16.mxu0 %v1860_v57 }
 0x5ea   :  { %1691 = vmatmul.mubr.msk.f32.vlgmr.msra.gmra.mrb[12].mxu0 %vm214_vm2, %v869_v8 }
 0x5eb   :  { %1766 = vmatpush3.bf16.msra.mxu0 %v1759_v60  ;;  %1702 = vmatprep.mubr.msk.f32.mxu0 %vm1856_vm1, %v1855_v16 }
 0x6b5   :  { %v623_v9 = vpop.f32.mrb[8].mxu0 }
 0x6b6   :  { %v697_v10 = vadd.f32 %v696_v5, %v623_v9  ;;  %v1670_v11 = vpop.f32.mrb[9].mxu0 }
 0x6b8   :  { %v1186_v38 = vadd.f32 %v1553_v37, %v697_v10 }
 0x6b9   :  { %v774_v12 = vpop.f32.mrb[10].mxu0 }
 0x6ba   :  { %v778_v17 = vmul.f32 0.25, %v774_v12  ;;  %v1682_v18 = vpop.f32.mrb[11].mxu0  ;;  %v1188_v39 = vsel %vm42_vm0, %v1186_v38, 0.0  ;;  %v1229_v12 = vld [vmem:[%s2140_s3 + $0x60] sm:$0xff] }
 0x6bb   :  { %v1231_v18 = vld [vmem:[%s2140_s3 + $0x70] sm:$0xff] }
 0x6bc   :  { %v779_v19 = vadd.f32 %v1544_v14, %v778_v17 }
 0x6bd   :  { %v942_v21 = vpop.f32.mrb[12].mxu0 }
 0x6be   :  { %v946_v22 = vmul.f32 0.25, %v942_v21  ;;  %v1692_v23 = vpop.f32.mrb[13].mxu0  ;;  %v780_v24 = vsel %vm293_vm3, %v779_v19, -inf }
 0x6bf   :  { %781 = vmax.xlane.f32.xlu1 %v780_v24 }
 0x6c0   :  { %v947_v25 = vadd.f32 %v1544_v14, %v946_v22  ;;  %v1230_v14 = vld [vmem:[%s2140_s3 + $0x68] sm:$0xff] }
 0x6c1   :  { %v1770_v17 = vpack.c.bf16 %v1230_v14, %v1229_v12 }
 0x6c2   :  { %v948_v26 = vsel %vm293_vm3, %v947_v25, -inf }
 0x6c3   :  { %949 = vmax.xlane.f32.xlu0 %v948_v26  ;;  %1771 = vmatprep.subr.bf16.mxu0 %v1770_v17 }
 0x6d9   :  { %960 = vrot.lane.b32.xlu0 %v1952_v20, %s1859_s23 }
 0x74c   :  { %v782_v27 = vpop.xlane.xlu1 %781 }
 0x74d   :  { %v783_v28 = vsub.f32 %v779_v19, %v782_v27  ;;  %v1232_v19 = vld [vmem:[%s2140_s3 + $0x78] sm:$0xff] }
 0x74e   :  { %v1774_v21 = vpack.c.bf16 %v1232_v19, %v1231_v18 }
 0x74f   :  { %v784_v29 = vmul.f32 1.442695, %v783_v28 }
 0x750   :  { %v950_v30 = vpop.xlane.xlu0 %949 }
 0x751   :  { %1811 = vpow2.f32 %v784_v29  ;;  %v951_v31 = vsub.f32 %v947_v25, %v950_v30  ;;  %v1378_v30 = vld [vmem:[%s2140_s3 + $0x80] sm:$0xff] }
 0x753   :  { %v952_v32 = vmul.f32 1.442695, %v951_v31  ;;  %v1379_v31 = vld [vmem:[%s2140_s3 + $0x88] sm:$0xff] }
 0x754   :  { %v961_v45 = vpop.permute.xlu0 %960 }
 0x755   :  { %1813 = vpow2.f32 %v952_v32  ;;  %v1778_v32 = vpack.c.bf16 %v1379_v31, %v1378_v30 }
 0x75b   :  { %v1812_v33 = vpop.eup %1811 }
 0x75c   :  { %v786_v34 = vsel %vm293_vm3, %v1812_v33, 0.0 }
 0x75d   :  { %787 = vadd.xlane.f32.xlu1 %v786_v34 }
 0x75f   :  { %v1814_v35 = vpop.eup %1813 }
 0x760   :  { %v954_v36 = vsel %vm293_vm3, %v1814_v35, 0.0 }
 0x761   :  { %955 = vadd.xlane.f32.xlu1 %v954_v36  ;;  %v1383_v36 = vld [vmem:[%s2140_s3 + $0xa8] sm:$0xff] }
 0x772   :  { %792 = vrot.lane.b32.xlu1 %v1952_v20, %s1857_s19 }
 0x796   :  { %1189 = vadd.xlane.f32.xlu1 %v1188_v39  ;;  %v1385_v39 = vld [vmem:[%s2140_s3 + $0xb8] sm:$0xff] }
 0x7ea   :  { %v788_v40 = vpop.xlane.xlu1 %787 }
 0x7eb   :  { %1815 = vrcp.f32 %v788_v40 }
 0x7ee   :  { %v956_v41 = vpop.xlane.xlu1 %955 }
 0x7ef   :  { %1817 = vrcp.f32 %v956_v41  ;;  %v1556_v41 = vld [vmem:[%s2141_s4 + $0x3] ss:$0 sm:$0xff] }
 0x7f2   :  { %v793_v42 = vpop.permute.xlu1 %792 }
 0x7f3   :  { %1684 = vmatpush3.msra.mxu1 %v793_v42 }
 0x7f4   :  { %1693 = vmatprep.subr.mxu1 %v1855_v16 }
 0x7f5   :  { %v1816_v43 = vpop.eup %1815 }
 0x7f6   :  { %v791_v44 = vmul.f32 %v1816_v43, %v1812_v33  ;;  %v1380_v33 = vld [vmem:[%s2140_s3 + $0x90] sm:$0xff] }
 0x7f8   :  { %1686 = vmatmul.mubr.msk.f32.vlgmr.msra.gmra.mrb[6].mxu1 %vm293_vm3, %v791_v44 }
 0x7f9   :  { %v1818_v20 = vpop.eup %1817  ;;  %1694 = vmatpush3.msra.mxu1 %v961_v45  ;;  %1695 = vmatprep.mubr.msk.f32.mxu1 %vm1856_vm1, %v1855_v16 }
 0x7fa   :  { %v959_v46 = vmul.f32 %v1818_v20, %v1814_v35  ;;  %1767 = vmatprep.subr.bf16.mxu1 %v1860_v57  ;;  %v1382_v35 = vld [vmem:[%s2140_s3 + $0xa0] sm:$0xff] }
 0x7fc   :  { %1696 = vmatmul.mubr.msk.f32.vlgmr.msra.gmra.mrb[8].mxu1 %vm293_vm3, %v959_v46 }
 0x7fd   :  { %1769 = vmatpush3.bf16.msra.mxu1 %v1999_v1  ;;  %1709 = vmatprep.mubr.msk.f32.mxu1 %vm1856_vm1, %v1855_v16  ;;  %v1555_v16 = vld [vmem:[%s2141_s4 + $0x6] ss:$0 sm:$0xff] }
 0x7fe   :  { %1779 = vmatprep.subr.bf16.mxu1 %v1778_v32 }
 0x823   :  { %v1190_v47 = vpop.xlane.xlu1 %1189 }
 0x824   :  { %v1195_v48 = vmul.f32 0.03125, %v1190_v47 }
 0x826   :  { %v1197_v49 = vsub.f32 %v1186_v38, %v1195_v48  ;;  %v1384_v38 = vld [vmem:[%s2140_s3 + $0xb0] sm:$0xff] }
 0x827   :  { %v1790_v40 = vpack.c.bf16 %v1385_v39, %v1384_v38 }
 0x828   :  { %v1199_v50 = vmul.f32 %v1197_v49, %v1197_v49 }
 0x82a   :  { %v1201_v51 = vsel %vm42_vm0, %v1199_v50, 0.0 }
 0x82b   :  { %1202 = vadd.xlane.f32.xlu1 %v1201_v51 }
 0x8b8   :  { %v1203_v52 = vpop.xlane.xlu1 %1202 }
 0x8b9   :  { %v1207_v53 = vmul.f32 0.03125, %v1203_v52 }
 0x8bb   :  { %v1209_v54 = vadd.f32 1e-12, %v1207_v53 }
 0x8bd   :  { %1819 = vrsqrt.f32 %v1209_v54 }
 0x8c7   :  { %v1820_v55 = vpop.eup %1819 }
 0x8c8   :  { %v1213_v57 = vmul.f32 %v1820_v55, %v1197_v49 }
 0x8ca   :  { %v1219_v58 = vmul.f32 %v1554_v56, %v1213_v57 }
 0x8cb   :  { %v864_v59 = vpop.f32.mrb[6].mxu1 }
 0x8cc   :  { %v1687_v60 = vpop.f32.mrb[7].mxu1  ;;  %1710 = vmatmul.mubr.msk.f32.vlgmr.msra.gmra.mrb[10].mxu1 %vm214_vm2, %v864_v59  ;;  %v1225_v61 = vadd.f32 %v1555_v16, %v1219_v58 }
 0x8cd   :  { %1781 = vmatpush3.bf16.msra.mxu1 %v1778_v32 }
 0x8ce   :  { %v2057_v62 = vadd.f32 %v1225_v61, %v1925_v13 }
 0x8cf   :  { %v1032_v63 = vpop.f32.mrb[8].mxu1 }
 0x8d0   :  { %v1697_v0 = vpop.f32.mrb[9].mxu1  ;;  %1703 = vmatmul.mubr.msk.f32.vlgmr.msra.gmra.mrb[14].mxu0 %vm214_vm2, %v1032_v63 }
 0x8d1   :  { %1720 = vmatprep.mubr.msk.f32.mxu0 %vm42_vm0, %v2057_v62  ;;  %1773 = vmatpush3.bf16.msra.mxu0 %v1770_v17 }
 0x8d2   :  { %1775 = vmatprep.subr.bf16.mxu0 %v1774_v21 }
 0x8d5   :  { %1777 = vmatpush3.bf16.msra.mxu0 %v1774_v21 }
 0x99f   :  { %v1178_v1 = vpop.f32.mrb[10].mxu1 }
 0x9a0   :  { %v1711_v2 = vpop.f32.mrb[11].mxu1 }
 0x9a3   :  { %v1105_v3 = vpop.f32.mrb[14].mxu0 }
 0x9a4   :  { %v1179_v4 = vadd.f32 %v1178_v1, %v1105_v3  ;;  %v1704_v5 = vpop.f32.mrb[15].mxu0 }
 0x9a6   :  { %v1187_v6 = vadd.f32 %v1553_v37, %v1179_v4  ;;  %v1786_v37 = vpack.c.bf16 %v1383_v36, %v1382_v35 }
 0x9a8   :  { %v1191_v7 = vsel %vm42_vm0, %v1187_v6, 0.0 }
 0x9a9   :  { %1192 = vadd.xlane.f32.xlu0 %v1191_v7 }
 0xa36   :  { %v1193_v8 = vpop.xlane.xlu0 %1192 }
 0xa37   :  { %v1196_v9 = vmul.f32 0.03125, %v1193_v8 }
 0xa39   :  { %v1198_v13 = vsub.f32 %v1187_v6, %v1196_v9 }
 0xa3b   :  { %v1200_v10 = vmul.f32 %v1198_v13, %v1198_v13 }
 0xa3d   :  { %v1204_v11 = vsel %vm42_vm0, %v1200_v10, 0.0 }
 0xa3e   :  { %1205 = vadd.xlane.f32.xlu1 %v1204_v11 }
 0xacb   :  { %v1206_v22 = vpop.xlane.xlu1 %1205 }
 0xacc   :  { %v1208_v23 = vmul.f32 0.03125, %v1206_v22 }
 0xace   :  { %v1210_v24 = vadd.f32 1e-12, %v1208_v23 }
 0xad0   :  { %1821 = vrsqrt.f32 %v1210_v24 }
 0xada   :  { %v1822_v25 = vpop.eup %1821 }
 0xadb   :  { %v1214_v26 = vmul.f32 %v1822_v25, %v1198_v13 }
 0xadd   :  { %v1220_v27 = vmul.f32 %v1554_v56, %v1214_v26 }
 0xadf   :  { %v1226_v28 = vadd.f32 %v1555_v16, %v1220_v27 }
 0xae1   :  { %v2077_v29 = vadd.f32 %v1226_v28, %v1935_v15  ;;  %v1381_v15 = vld [vmem:[%s2140_s3 + $0x98] sm:$0xff] }
 0xae2   :  { %v1782_v34 = vpack.c.bf16 %v1381_v15, %v1380_v33 }
 0xae3   :  { %1721 = vmatmul.mubr.msk.f32.vlgmr.msra.gmra.mrb[16].mxu0 %vm42_vm0, %v2077_v29 }
 0xae4   :  { %1783 = vmatprep.subr.bf16.mxu1 %v1782_v34 }
 0xae5   :  { %1785 = vmatpush3.bf16.msra.mxu1 %v1782_v34 }
 0xae6   :  { %1787 = vmatprep.subr.bf16.mxu1 %v1786_v37 }
 0xae9   :  { %1789 = vmatpush3.bf16.msra.mxu1 %v1786_v37 }
 0xaea   :  { %1791 = vmatprep.subr.bf16.mxu1 %v1790_v40 }
 0xaed   :  { %1793 = vmatpush3.bf16.msra.mxu1 %v1790_v40 }
 0xbb6   :  { %v1722_v42 = vpop.f32.mrb[16].mxu0 }
 0xbb7   :  { %v1315_v43 = vadd.f32 %v1722_v42, %v1556_v41  ;;  %v1309_v44 = vpop.f32.mrb[17].mxu0  ;;  %v1561_v42 = vld [vmem:[%s2141_s4 + $0x4] ss:$0 sm:$0xff] }
 0xbb8   :  { %v1310_v45 = vadd.f32 %v1556_v41, %v1309_v44 }
 0xbb9   :  { %v1321_v20 = vmul.f32 0.70710677, %v1315_v43  ;;  %v1319_v39 = vmul.f32 0.5, %v1315_v43 }
 0xbba   :  { %v1320_v46 = vmul.f32 0.70710677, %v1310_v45  ;;  %v1318_v37 = vmul.f32 0.5, %v1310_v45 }
 0xbbb   :  { %v1560_v47 = vclamps-f32 %v1321_v20, 4.0 }
 0xbbc   :  { %v1559_v48 = vclamps-f32 %v1320_v46, 4.0 }
 0xbbd   :  { %v1327_v49 = vmul.f32 %v1560_v47, %v1560_v47 }
 0xbbe   :  { %v1326_v50 = vmul.f32 %v1559_v48, %v1559_v48 }
 0xbbf   :  { %v1345_v51 = vmul.f32 -1.1791603e-07, %v1327_v49  ;;  %v1329_v52 = vmul.f32 0.00022905065, %v1327_v49 }
 0xbc0   :  { %v1344_v53 = vmul.f32 -1.1791603e-07, %v1326_v50  ;;  %v1328_v55 = vmul.f32 0.00022905065, %v1326_v50 }
 0xbc1   :  { %v1347_v54 = vadd.f32 2.3547966e-05, %v1345_v51  ;;  %v1331_v16 = vadd.f32 0.003408291, %v1329_v52 }
 0xbc2   :  { %v1346_v56 = vadd.f32 2.3547966e-05, %v1344_v53  ;;  %v1330_v60 = vadd.f32 0.003408291, %v1328_v55 }
 0xbc3   :  { %v1349_v57 = vmul.f32 %v1347_v54, %v1327_v49  ;;  %v1333_v0 = vmul.f32 %v1331_v16, %v1327_v49 }
 0xbc4   :  { %v1348_v58 = vmul.f32 %v1346_v56, %v1326_v50  ;;  %v1332_v3 = vmul.f32 %v1330_v60, %v1326_v50 }
 0xbc5   :  { %v1351_v59 = vadd.f32 0.0010179626, %v1349_v57  ;;  %v1335_v6 = vadd.f32 0.050955694, %v1333_v0 }
 0xbc6   :  { %v1350_v61 = vadd.f32 0.0010179626, %v1348_v58  ;;  %v1334_v9 = vadd.f32 0.050955694, %v1332_v3 }
 0xbc7   :  { %v1353_v63 = vmul.f32 %v1351_v59, %v1327_v49  ;;  %v1337_v11 = vmul.f32 %v1335_v6, %v1327_v49 }
 0xbc8   :  { %v1352_v1 = vmul.f32 %v1350_v61, %v1326_v50  ;;  %v1336_v17 = vmul.f32 %v1334_v9, %v1326_v50 }
 0xbc9   :  { %v1355_v2 = vadd.f32 0.01407047, %v1353_v63  ;;  %v1339_v21 = vadd.f32 0.18520832, %v1337_v11 }
 0xbca   :  { %v1354_v4 = vadd.f32 0.01407047, %v1352_v1  ;;  %v1338_v24 = vadd.f32 0.18520832, %v1336_v17  ;;  %v1564_v1 = vld [vmem:[%s2141_s4 + $0x7] ss:$0 sm:$0xff] }
 0xbcb   :  { %v1357_v5 = vmul.f32 %v1355_v2, %v1327_v49  ;;  %v1341_v26 = vmul.f32 %v1339_v21, %v1327_v49 }
 0xbcc   :  { %v1356_v7 = vmul.f32 %v1354_v4, %v1326_v50  ;;  %v1340_v27 = vmul.f32 %v1338_v24, %v1326_v50 }
 0xbcd   :  { %v1359_v8 = vadd.f32 0.11098505, %v1357_v5  ;;  %v1343_v28 = vadd.f32 1.1283791, %v1341_v26  ;;  %v1565_v5 = vld [vmem:[%s2141_s4 + $0x8] ss:$0 sm:$0xff] }
 0xbce   :  { %v1358_v13 = vadd.f32 0.11098505, %v1356_v7  ;;  %v1342_v30 = vadd.f32 1.1283791, %v1340_v27 }
 0xbcf   :  { %v1361_v10 = vmul.f32 %v1359_v8, %v1327_v49  ;;  %v1369_v31 = vmul.f32 %v1560_v47, %v1343_v28 }
 0xbd0   :  { %v1360_v12 = vmul.f32 %v1358_v13, %v1326_v50  ;;  %v1368_v33 = vmul.f32 %v1559_v48, %v1342_v30 }
 0xbd1   :  { %v1363_v14 = vadd.f32 0.49746925, %v1361_v10 }
 0xbd2   :  { %v1362_v18 = vadd.f32 0.49746925, %v1360_v12 }
 0xbd3   :  { %v1365_v19 = vmul.f32 %v1363_v14, %v1327_v49 }
 0xbd4   :  { %v1364_v22 = vmul.f32 %v1362_v18, %v1326_v50 }
 0xbd5   :  { %v1367_v23 = vadd.f32 1.0, %v1365_v19 }
 0xbd6   :  { %v1366_v25 = vadd.f32 1.0, %v1364_v22 }
 0xbd7   :  { %1823 = vrcp.f32 %v1367_v23 }
 0xbd8   :  { %1825 = vrcp.f32 %v1366_v25 }
 0xbe1   :  { %v1824_v32 = vpop.eup %1823 }
 0xbe2   :  { %v1826_v15 = vpop.eup %1825  ;;  %v1373_v34 = vmul.f32 %v1824_v32, %v1369_v31 }
 0xbe3   :  { %v1371_v35 = vmul.f32 %v1826_v15, %v1368_v33 }
 0xbe4   :  { %v1375_v36 = vadd.f32 1.0, %v1373_v34 }
 0xbe5   :  { %v1374_v38 = vadd.f32 1.0, %v1371_v35 }
 0xbe6   :  { %v1377_v41 = vmul.f32 %v1375_v36, %v1319_v39 }
 0xbe7   :  { %v1376_v40 = vmul.f32 %v1374_v38, %v1318_v37 }
 0xbe9   :  { %1739 = vmatprep.mubr.msk.f32.mxu1 %vm1390_vm4, %v1376_v40 }
 0xbea   :  { %1740 = vmatmul.mubr.msk.f32.vlgmr.msra.gmra.mrb[12].mxu1 %vm1390_vm4, %v1377_v41 }
 0xcbd   :  { %v1741_v44 = vpop.f32.mrb[12].mxu1 }
 0xcbe   :  { %v1469_v20 = vadd.f32 %v1741_v44, %v1561_v42  ;;  %v1463_v46 = vpop.f32.mrb[13].mxu1 }
 0xcbf   :  { %v1464_v47 = vadd.f32 %v1561_v42, %v1463_v46 }
 0xcc0   :  { %v1475_v48 = vsel %vm42_vm0, %v1469_v20, 0.0 }
 0xcc1   :  { %1476 = vadd.xlane.f32.xlu1 %v1475_v48  ;;  %v1472_v45 = vsel %vm42_vm0, %v1464_v47, 0.0 }
 0xcc2   :  { %1473 = vadd.xlane.f32.xlu0 %v1472_v45 }
 0xd4e   :  { %v1477_v43 = vpop.xlane.xlu1 %1476 }
 0xd4f   :  { %v1479_v49 = vmul.f32 0.03125, %v1477_v43  ;;  %v1474_v50 = vpop.xlane.xlu0 %1473 }
 0xd50   :  { %v1478_v51 = vmul.f32 0.03125, %v1474_v50 }
 0xd51   :  { %v1481_v52 = vsub.f32 %v1469_v20, %v1479_v49 }
 0xd52   :  { %v1480_v53 = vsub.f32 %v1464_v47, %v1478_v51 }
 0xd53   :  { %v1483_v54 = vmul.f32 %v1481_v52, %v1481_v52 }
 0xd54   :  { %v1482_v55 = vmul.f32 %v1480_v53, %v1480_v53 }
 0xd55   :  { %v1487_v56 = vsel %vm42_vm0, %v1483_v54, 0.0 }
 0xd56   :  { %1488 = vadd.xlane.f32.xlu1 %v1487_v56  ;;  %v1484_v57 = vsel %vm42_vm0, %v1482_v55, 0.0 }
 0xd57   :  { %1485 = vadd.xlane.f32.xlu0 %v1484_v57 }
 0xde3   :  { %v1489_v16 = vpop.xlane.xlu1 %1488 }
 0xde4   :  { %v1491_v58 = vmul.f32 0.03125, %v1489_v16  ;;  %v1486_v59 = vpop.xlane.xlu0 %1485 }
 0xde5   :  { %v1490_v60 = vmul.f32 0.03125, %v1486_v59 }
 0xde6   :  { %v1493_v61 = vadd.f32 1e-12, %v1491_v58 }
 0xde7   :  { %v1492_v63 = vadd.f32 1e-12, %v1490_v60 }
 0xde8   :  { %1827 = vrsqrt.f32 %v1493_v61 }
 0xde9   :  { %1829 = vrsqrt.f32 %v1492_v63 }
 0xdf2   :  { %v1828_v0 = vpop.eup %1827 }
 0xdf3   :  { %v1830_v2 = vpop.eup %1829  ;;  %v1497_v3 = vmul.f32 %v1828_v0, %v1481_v52 }
 0xdf4   :  { %v1496_v4 = vmul.f32 %v1830_v2, %v1480_v53 }
 0xdf5   :  { %v1503_v6 = vmul.f32 %v1564_v1, %v1497_v3 }
 0xdf6   :  { %v1502_v7 = vmul.f32 %v1564_v1, %v1496_v4 }
 0xdf7   :  { %v1509_v8 = vadd.f32 %v1565_v5, %v1503_v6 }
 0xdf8   :  { %v1508_v9 = vadd.f32 %v1565_v5, %v1502_v7 }
 0xdf9   :  { %v1511_v13 = vadd.f32 %v1509_v8, %v2077_v29 }
 0xdfa   :  { %v1510_v10 = vadd.f32 %v1508_v9, %v2057_v62 }
 0xdfb   :  { %1513 = vst.msk [vmem:[#allocation2 + $0x8] sm:$0xff] %vm42_vm0, %v1511_v13 }
 0xdfc   :  { %1512 = vst.msk [vmem:[#allocation2] sm:$0xff] %vm42_vm0, %v1510_v10 }
 0xdfd   :  { %1842 = shalt.err (!%p1839_p4)
}
 0xdfe   :  { %s1843_s19 = scalar_lea.hbm %s2142_s5, 256 }
 0xdff   :  { %p1844_p5 = scmp.ne.s32.totalorder %s2142_s5, %s1843_s19  ;;  %p1847_p6 = scmp.lt.u32.totalorder %s1843_s19, %s2142_s5 }
 0xe01   :  { %p1849_p7 = pnand %p1847_p6, %p1844_p5 }
 0xe03   :  { %1852 = shalt.err (!%p1849_p7)
}
 0xe04   :  { %s1862_s24 = smov 128   ;;  %s1863_s25 = smov 8  }
 0xe05   :  { %1525 = dma.vmem_to_hbm [thread:$0]  %s1520_s0, 256, %s2142_s5, [#allocation3], %s1862_s24, %s1862_s24, %s1863_s25  }
 0xe06   :  { %1853 = dma.done.wait [#allocation3], 256  }
 0xe07   :  { %1854 = vsyncadd [#allocation3], 4294967040 }
 0xe08   :  { %1529 = vsyncpa [#allocation3], 1 }

</bundles_post_ra>
